<compile_context>
chip_gen: v5e
topology: v5e:2x2
jax: 0.10.0
libtpu: 0.0.40
codegen_flags: <defaults>
</compile_context>

<pallas_src>
import functools

import jax
import jax.numpy as jnp
from jax import lax
from jax.experimental import pallas as pl
from jax.experimental.pallas import tpu as pltpu

_LANES = 128
_SUBLANES = 8


def _focal_terms(yp, yt, alpha, gamma, binary_targets=False):
    """Elementwise alpha * (1 - pt)**gamma * ce.

    BCE matches torch.nn.functional.binary_cross_entropy (each log term clamped at
    -100). Works both inside the Pallas kernel and in plain JAX (tail path).
    """
    if binary_targets:
        # Hard {0,1} labels: pt = p or (1-p) directly -> 1 transcendental/element.
        pt = jnp.where(yt >= 0.5, yp, 1.0 - yp)
        ce = -jnp.maximum(jnp.log(pt), -100.0)
        pt = jnp.exp(-ce)  # re-derive through the clamp so it matches torch exactly
    else:
        log_p = jnp.maximum(jnp.log(yp), -100.0)
        log_1mp = jnp.maximum(jnp.log(1.0 - yp), -100.0)
        ce = -(yt * log_p + (1.0 - yt) * log_1mp)
        pt = jnp.exp(-ce)
    base = 1.0 - pt
    g = float(gamma)
    if g == int(g) and 1 <= int(g) <= 8:
        # Avoid a pow (extra EUP transcendentals) for small integer gammas (default 2).
        w = base
        for _ in range(int(g) - 1):
            w = w * base
    else:
        w = base ** jnp.float32(g)
    return jnp.float32(alpha) * w * ce


def _focal_loss_kernel(yp_ref, yt_ref, out_ref, *, alpha, gamma, binary_targets,
                       row_tile, last_valid_rows):
    # Upcast on load; inputs stay in their native dtype in HBM.
    yp = yp_ref[...].astype(jnp.float32)
    yt = yt_ref[...].astype(jnp.float32)

    focal = _focal_terms(yp, yt, alpha, gamma, binary_targets)

    def reduce_and_store(x):
        if row_tile % _SUBLANES == 0:
            # (rt, 128) -> (rt//8, 8, 128): layout-preserving split of the row axis;
            # sum over axis 0 is pure cross-vreg VPU adds -> true (8, 128) partials.
            out_ref[...] = jnp.sum(
                x.reshape(row_tile // _SUBLANES, _SUBLANES, _LANES), axis=0)
        else:
            # Tiny single-block fallback (rt == rows, rows % 8 != 0): splat the
            # per-lane sums; the wrapper reads only row 0 in this case.
            out_ref[...] = jnp.broadcast_to(
                jnp.sum(x, axis=0, keepdims=True), (_SUBLANES, _LANES))

    if last_valid_rows is None:
        # rows % rt == 0: no block ever reads past the array -> no mask anywhere.
        reduce_and_store(focal)
    else:
        k = pl.program_id(0)
        last = pl.num_programs(0) - 1

        @pl.when(k != last)
        def _():
            reduce_and_store(focal)

        @pl.when(k == last)
        def _():
            # Only the final partial block needs masking; (rt, 1) iota, broadcast select.
            row_ids = lax.broadcasted_iota(jnp.int32, (row_tile, 1), 0)
            reduce_and_store(jnp.where(row_ids < last_valid_rows, focal, 0.0))


def _vmem_capacity_bytes():
    try:
        return int(pltpu.get_tpu_info().vmem_capacity_bytes)
    except Exception:
        return 64 * 1024 * 1024  # conservative: assume the smallest (v7x per-TC)


def _choose_row_tile(rows, itemsize, big_vmem):
    # Target bytes per input block: ~4 MiB on 128 MiB-VMEM parts, ~1 MiB on 64 MiB parts
    # (blocks >= ~1 MiB already reach ~85% of HBM roofline). Dtype-aware so bf16 inputs
    # keep the same bytes/step (halving per-step overhead fraction).
    target_bytes = (4 << 20) if big_vmem else (1 << 20)
    rt_cap = max(256, (target_bytes // (_LANES * itemsize)) // 16 * 16)
    if rows > rt_cap:
        return rt_cap
    # Mid-size input: still force >= 2 grid steps so pipelining and v7x dual-TC
    # sharding engage (each extra step costs only ~0.35 us).
    rt = max(rows // 8, 256)
    rt = (rt // 16) * 16
    if 16 <= rt < rows:
        return rt
    return rows  # tiny input: single full-extent block (always a legal BlockSpec)


def focal_loss(y_pred, y_true, alpha, gamma=2.0, *, binary_targets=False, row_tile=None):
    """y_pred: probabilities, y_true: targets, same shape. Returns scalar loss.

    binary_targets=True enables a faster path that is exactly equivalent only for
    hard {0,1} labels; the default path handles soft labels like torch BCE.
    """
    assert y_pred.shape == y_true.shape, (y_pred.shape, y_true.shape)
    total = int(y_pred.size)
    yp_flat = y_pred.reshape(-1)
    yt_flat = y_true.reshape(-1)

    main = (total // _LANES) * _LANES      # elements handled by the kernel
    total_sum = jnp.float32(0.0)

    if main > 0:
        rows = main // _LANES
        itemsize = max(y_pred.dtype.itemsize, y_true.dtype.itemsize)
        big_vmem = _vmem_capacity_bytes() >= 96 * 1024 * 1024

        if row_tile is not None:
            rt = min(int(row_tile), rows)
            if rt < rows:
                rt = max(16, (rt // 16) * 16)   # keep tiled blocks (8,128)-legal
        else:
            rt = _choose_row_tile(rows, itemsize, big_vmem)
        nb = (rows + rt - 1) // rt
        needs_mask = (rows % rt) != 0
        last_valid_rows = rows - (nb - 1) * rt if needs_mask else None

        # Contiguous reshape -> free view when main == total; when slicing a prefix,
        # allow_input_fusion below lets XLA fuse the slice into the kernel operands
        # instead of materializing a near-full HBM copy.
        yp2 = yp_flat[:main].reshape(rows, _LANES)
        yt2 = yt_flat[:main].reshape(rows, _LANES)

        kernel = functools.partial(
            _focal_loss_kernel, alpha=float(alpha), gamma=float(gamma),
            binary_targets=bool(binary_targets), row_tile=rt,
            last_valid_rows=last_valid_rows)

        compiler_params = pltpu.CompilerParams(
            dimension_semantics=("parallel",),   # lets v7x shard blocks across both TCs
            vmem_limit_bytes=(64 if big_vmem else 32) * 1024 * 1024,
            allow_input_fusion=([True, True] if main < total else None),
        )

        partials = pl.pallas_call(
            kernel,
            out_shape=jax.ShapeDtypeStruct((_SUBLANES, _LANES * nb), jnp.float32),
            grid_spec=pltpu.PrefetchScalarGridSpec(
                num_scalar_prefetch=0,
                grid=(nb,),
                in_specs=[
                    pl.BlockSpec((rt, _LANES), lambda k: (k, 0)),
                    pl.BlockSpec((rt, _LANES), lambda k: (k, 0)),
                ],
                out_specs=pl.BlockSpec((_SUBLANES, _LANES), lambda k: (0, k)),
            ),
            compiler_params=compiler_params,
        )(yp2, yt2)

        if rt % _SUBLANES == 0:
            total_sum = jnp.sum(partials)        # every entry is a real partial sum
        else:
            total_sum = jnp.sum(partials[0])     # splat fallback: rows identical

    if main < total:
        # Sub-128-element remainder (only when total % 128 != 0): negligible, plain JAX.
        tail = _focal_terms(yp_flat[main:].astype(jnp.float32),
                            yt_flat[main:].astype(jnp.float32),
                            alpha, gamma, binary_targets)
        total_sum = total_sum + jnp.sum(tail)

    return total_sum / jnp.float32(total)


def _reference_focal_loss(y_pred, y_true, alpha, gamma):
    yp = y_pred.astype(jnp.float32)
    yt = y_true.astype(jnp.float32)
    log_p = jnp.maximum(jnp.log(yp), -100.0)
    log_1mp = jnp.maximum(jnp.log(1.0 - yp), -100.0)
    ce = -(yt * log_p + (1.0 - yt) * log_1mp)
    pt = jnp.exp(-ce)
    return jnp.mean(alpha * (1.0 - pt) ** gamma * ce)


if __name__ == "__main__":
    key = jax.random.PRNGKey(0)
    alpha, gamma = 0.25, 2.0

    def make_inputs(k, shape):
        k1, k2 = jax.random.split(k)
        yp = jax.nn.sigmoid(jax.random.normal(k1, shape, dtype=jnp.float32))
        yt = (jax.random.uniform(k2, shape) > 0.5).astype(jnp.float32)
        return yp, yt

    k1, k2, k3 = jax.random.split(key, 3)

    # 1) (N, C, H, W) probabilities + binary float targets (as torch BCE expects).
    shape = (2, 4, 16, 16)
    y_pred, y_true = make_inputs(k1, shape)
    loss = jax.block_until_ready(focal_loss(y_pred, y_true, alpha, gamma))
    ref = _reference_focal_loss(y_pred, y_true, alpha, gamma)
    assert jnp.allclose(loss, ref, atol=1e-5, rtol=1e-5), (loss, ref)

    # 1b) hard-label fast path (equivalent for {0,1} targets).
    loss_fast = jax.block_until_ready(
        focal_loss(y_pred, y_true, alpha, gamma, binary_targets=True))
    assert jnp.allclose(loss_fast, ref, atol=1e-5, rtol=1e-5), (loss_fast, ref)

    # 2) multi-block grid with a masked (partial) last block.
    shape2 = (3, 4, 16, 16)                       # 3072 elems -> 24 rows, rt=16 -> nb=2
    y_pred2, y_true2 = make_inputs(k2, shape2)
    loss2 = jax.block_until_ready(focal_loss(y_pred2, y_true2, alpha, gamma, row_tile=16))
    ref2 = _reference_focal_loss(y_pred2, y_true2, alpha, gamma)
    assert jnp.allclose(loss2, ref2, atol=1e-5, rtol=1e-5), (loss2, ref2)

    # 3) size not a multiple of 128: kernel handles the 128-aligned prefix,
    #    plain-JAX epilogue handles the <128-element tail.
    shape3 = (3, 5, 7, 11)                        # 1155 elems
    y_pred3, y_true3 = make_inputs(k3, shape3)
    loss3 = jax.block_until_ready(focal_loss(y_pred3, y_true3, alpha, gamma))
    ref3 = _reference_focal_loss(y_pred3, y_true3, alpha, gamma)
    assert jnp.allclose(loss3, ref3, atol=1e-5, rtol=1e-5), (loss3, ref3)

    print("KERNEL_OK")
</pallas_src>

<mosaic_0001>
module attributes {stable_mosaic.version = 11 : i64} {
  func.func @_focal_loss_kernel(%arg0: i32, %arg1: memref<16x128xf32, #tpu.memory_space<vmem>>, %arg2: memref<16x128xf32, #tpu.memory_space<vmem>>, %arg3: memref<8x128xf32, #tpu.memory_space<vmem>>) attributes {dimension_semantics = [#tpu.dimension_semantics<parallel>], iteration_bounds = array<i64: 1>, scalar_prefetch = 0 : i64, scratch_operands = 0 : i64, tpu.core_type = #tpu.core_type<tc>, window_params = [{transform_indices = @transform_0, window_bounds = array<i64: 16, 128>}, {transform_indices = @transform_1, window_bounds = array<i64: 16, 128>}, {transform_indices = @transform_2, window_bounds = array<i64: 8, 128>}]} {
    %c0 = arith.constant 0 : index
    %c0_0 = arith.constant 0 : index
    %0 = vector.load %arg1[%c0, %c0_0] : memref<16x128xf32, #tpu.memory_space<vmem>>, vector<16x128xf32>
    %c0_1 = arith.constant 0 : index
    %c0_2 = arith.constant 0 : index
    %1 = vector.load %arg2[%c0_1, %c0_2] : memref<16x128xf32, #tpu.memory_space<vmem>>, vector<16x128xf32>
    %2 = math.log %0 : vector<16x128xf32>
    %cst = arith.constant -1.000000e+02 : f32
    %3 = vector.broadcast %cst : f32 to vector<16x128xf32>
    %4 = arith.maximumf %2, %3 : vector<16x128xf32>
    %cst_3 = arith.constant 1.000000e+00 : f32
    %5 = vector.broadcast %cst_3 : f32 to vector<16x128xf32>
    %6 = arith.subf %5, %0 : vector<16x128xf32>
    %7 = math.log %6 : vector<16x128xf32>
    %cst_4 = arith.constant -1.000000e+02 : f32
    %8 = vector.broadcast %cst_4 : f32 to vector<16x128xf32>
    %9 = arith.maximumf %7, %8 : vector<16x128xf32>
    %10 = arith.mulf %1, %4 : vector<16x128xf32>
    %cst_5 = arith.constant 1.000000e+00 : f32
    %11 = vector.broadcast %cst_5 : f32 to vector<16x128xf32>
    %12 = arith.subf %11, %1 : vector<16x128xf32>
    %13 = arith.mulf %12, %9 : vector<16x128xf32>
    %14 = arith.addf %10, %13 : vector<16x128xf32>
    %cst_6 = arith.constant 0.000000e+00 : f32
    %15 = vector.broadcast %cst_6 : f32 to vector<16x128xf32>
    %16 = arith.subf %15, %14 : vector<16x128xf32>
    %cst_7 = arith.constant 0.000000e+00 : f32
    %17 = vector.broadcast %cst_7 : f32 to vector<16x128xf32>
    %18 = arith.subf %17, %16 : vector<16x128xf32>
    %19 = math.exp %18 : vector<16x128xf32>
    %cst_8 = arith.constant 1.000000e+00 : f32
    %20 = vector.broadcast %cst_8 : f32 to vector<16x128xf32>
    %21 = arith.subf %20, %19 : vector<16x128xf32>
    %22 = arith.mulf %21, %21 : vector<16x128xf32>
    %cst_9 = arith.constant 2.500000e-01 : f32
    %23 = vector.broadcast %cst_9 : f32 to vector<16x128xf32>
    %24 = arith.mulf %23, %22 : vector<16x128xf32>
    %25 = arith.mulf %24, %16 : vector<16x128xf32>
    %26 = vector.shape_cast %25 : vector<16x128xf32> to vector<2x8x128xf32>
    %cst_10 = arith.constant dense<0.000000e+00> : vector<8x128xf32>
    %27 = vector.multi_reduction <add>, %26, %cst_10 [0] : vector<2x8x128xf32> to vector<8x128xf32>
    %c0_11 = arith.constant 0 : index
    %c0_12 = arith.constant 0 : index
    %28 = vector.load %arg3[%c0_11, %c0_12] : memref<8x128xf32, #tpu.memory_space<vmem>>, vector<8x128xf32>
    tpu.vector_store %arg3[%c0_11, %c0_12], %27 {strides = array<i32>} : memref<8x128xf32, #tpu.memory_space<vmem>>, vector<8x128xf32>,
    return
  }
  func.func @transform_0(%arg0: i32) -> (i32, i32) {
    %c0_i32 = arith.constant 0 : i32
    %c0_i32_0 = arith.constant 0 : i32
    return %arg0, %c0_i32 : i32, i32
  }
  func.func @transform_1(%arg0: i32) -> (i32, i32) {
    %c0_i32 = arith.constant 0 : i32
    %c0_i32_0 = arith.constant 0 : i32
    return %arg0, %c0_i32 : i32, i32
  }
  func.func @transform_2(%arg0: i32) -> (i32, i32) {
    %c0_i32 = arith.constant 0 : i32
    %c0_i32_0 = arith.constant 0 : i32
    return %c0_i32, %arg0 : i32, i32
  }
}

</mosaic_0001>

<bundles_post_ra>
// kernel: tpu_custom_call.1
= control target key start
LH: loop header
LB: loop body
LE: loop exit
PB: predicated region body
PF: predicated region fallthrough
CT: control target
= control target key end

     0   :  { %7 = vsyncpa [#allocation3], 0  ;;  %s230_s0 = inlined_call_operand.hbm [shape: f32[16,128], index: 0, kind: input, shape index: {}]   ;;  %s231_s1 = inlined_call_operand.hbm [shape: f32[16,128], index: 1, kind: input, shape index: {}]   ;;  %s232_s2 = inlined_call_operand.hbm [shape: f32[8,128], index: 2, kind: output, shape index: {}]  }
   0x1   :  { %8 = vsyncpa [#allocation6], 0 }
   0x2   :  { %9 = vsyncpa [#allocation4], 0  ;;  %s14_s11 = sshll.u32 %s230_s0, 4  ;;  %s201_s12 = smov [#allocation2]   ;;  %s15_s11 = int_to_ptr.hbm [resolvable:$true] %s14_s11 }
   0x3   :  { %s16_s13 = sshll.u32 %s201_s12, 4  ;;  %s27_s16 = sshll.u32 %s231_s1, 4  ;;  %s17_s13 = int_to_ptr.vmem [resolvable:$true] %s16_s13  ;;  %s28_s16 = int_to_ptr.hbm [resolvable:$true] %s27_s16 }
   0x4   :  { %s202_s17 = smov 128   ;;  %s203_s18 = smov 8  }
   0x5   :  { %22 = dma.hbm_to_vmem [thread:$0]  %s15_s11, 256, %s17_s13, [#allocation3], %s202_s17, %s202_s17, %s203_s18  }
   0x6   :  { %s204_s19 = smov [#allocation5]  }
   0x7   :  { %s29_s20 = sshll.u32 %s204_s19, 4  ;;  %s30_s20 = int_to_ptr.vmem [resolvable:$true] %s29_s20 }
   0x8   :  { %35 = dma.hbm_to_vmem [thread:$0]  %s28_s16, 256, %s30_s20, [#allocation6], %s202_s17, %s202_s17, %s203_s18  }
   0x9   :  { %195 = dma.done.wait [#allocation3], 256  }
   0xa   :  { %196 = vsyncadd [#allocation3], 4294967040 }
   0xb   :  { %197 = dma.done.wait [#allocation6], 256  }
   0xc   :  { %198 = vsyncadd [#allocation6], 4294967040  ;;  %v44_v0 = vld [vmem:[#allocation2] sm:$0xff]  ;;  %v45_v1 = vld [vmem:[#allocation2 + $0x8] sm:$0xff]  ;;  %s205_s0 = smov [#allocation7]   ;;  %s95_s23 = sshll.u32 %s232_s2, 4  ;;  %s96_s23 = int_to_ptr.hbm [resolvable:$true] %s95_s23 }
   0xd   :  { %111 = vlog2.f32 %v44_v0  ;;  %v54_v2 = vsub.f32 1.0, %v44_v0  ;;  %v55_v3 = vsub.f32 1.0, %v45_v1  ;;  %v46_v5 = vld [vmem:[#allocation5] sm:$0xff]  ;;  %v47_v7 = vld [vmem:[#allocation5 + $0x8] sm:$0xff]  ;;  %s93_s1 = sshll.u32 %s205_s0, 4  ;;  %s94_s1 = int_to_ptr.vmem [resolvable:$true] %s93_s1 }
   0xe   :  { %113 = vlog2.f32 %v45_v1  ;;  %v64_v14 = vsub.f32 1.0, %v46_v5  ;;  %v65_v17 = vsub.f32 1.0, %v47_v7 }
   0xf   :  { %115 = vlog2.f32 %v54_v2 }
  0x10   :  { %117 = vlog2.f32 %v55_v3 }
  0x13   :  { %v112_v4 = vpop.eup %111 }
  0x14   :  { %v114_v6 = vpop.eup %113  ;;  %v49_v8 = vmul.f32 0.6931472, %v112_v4 }
  0x15   :  { %v116_v9 = vpop.eup %115  ;;  %v51_v10 = vmul.f32 0.6931472, %v114_v6 }
  0x16   :  { %v118_v11 = vpop.eup %117  ;;  %v52_v12 = vmax.f32 %v49_v8, -100.0  ;;  %v57_v13 = vmul.f32 0.6931472, %v116_v9 }
  0x17   :  { %v53_v15 = vmax.f32 %v51_v10, -100.0  ;;  %v59_v16 = vmul.f32 0.6931472, %v118_v11 }
  0x18   :  { %v60_v18 = vmax.f32 %v57_v13, -100.0  ;;  %v62_v19 = vmul.f32 %v52_v12, %v46_v5 }
  0x19   :  { %v61_v20 = vmax.f32 %v59_v16, -100.0  ;;  %v63_v21 = vmul.f32 %v53_v15, %v47_v7 }
  0x1a   :  { %v66_v22 = vmul.f32 %v64_v14, %v60_v18 }
  0x1b   :  { %v67_v23 = vmul.f32 %v65_v17, %v61_v20 }
  0x1c   :  { %v68_v24 = vadd.f32 %v66_v22, %v62_v19 }
  0x1d   :  { %v69_v25 = vadd.f32 %v67_v23, %v63_v21 }
  0x1e   :  { %v70_v26 = vsub.f32 0.0, %v68_v24 }
  0x1f   :  { %v71_v27 = vsub.f32 0.0, %v69_v25 }
  0x20   :  { %v72_v28 = vsub.f32 0.0, %v70_v26 }
  0x21   :  { %v73_v29 = vsub.f32 0.0, %v71_v27 }
  0x22   :  { %v74_v30 = vmul.f32 1.442695, %v72_v28 }
  0x23   :  { %v76_v31 = vmul.f32 1.442695, %v73_v29 }
  0x24   :  { %119 = vpow2.f32 %v74_v30 }
  0x25   :  { %121 = vpow2.f32 %v76_v31 }
  0x2a   :  { %v120_v32 = vpop.eup %119 }
  0x2b   :  { %v122_v33 = vpop.eup %121  ;;  %v78_v34 = vsub.f32 1.0, %v120_v32 }
  0x2c   :  { %v79_v35 = vsub.f32 1.0, %v122_v33 }
  0x2d   :  { %v80_v36 = vmul.f32 %v78_v34, %v78_v34 }
  0x2e   :  { %v81_v37 = vmul.f32 %v79_v35, %v79_v35 }
  0x2f   :  { %v82_v38 = vmul.f32 0.25, %v80_v36 }
  0x30   :  { %v83_v39 = vmul.f32 0.25, %v81_v37 }
  0x31   :  { %v84_v40 = vmul.f32 %v82_v38, %v70_v26 }
  0x32   :  { %v85_v41 = vmul.f32 %v83_v39, %v71_v27 }
  0x34   :  { %v86_v42 = vadd.f32 %v85_v41, %v84_v40 }
  0x36   :  { %87 = vst [vmem:[#allocation7] sm:$0xff] %v86_v42 }
  0x37   :  { %98 = dma.vmem_to_hbm [thread:$0]  %s94_s1, 128, %s96_s23, [#allocation4]  }
  0x38   :  { %199 = dma.done.wait [#allocation4], 128  }
  0x39   :  { %200 = vsyncadd [#allocation4], 4294967168 }
  0x3a   :  { %103 = vsyncpa [#allocation3], 1 }
  0x3b   :  { %104 = vsyncpa [#allocation6], 1 }
  0x3c   :  { %105 = vsyncpa [#allocation4], 1 }

</bundles_post_ra>
